<compile_context>
chip_gen: v5e
topology: v5e:2x2
jax: 0.10.0
libtpu: 0.0.40
codegen_flags: <defaults>
</compile_context>

<pallas_src>
import functools

import jax
import jax.numpy as jnp
from jax import lax
from jax.experimental import pallas as pl
from jax.experimental.pallas import tpu as pltpu


def _round_up(x, m):
    return ((x + m - 1) // m) * m


def _cdiv(a, b):
    return (a + b - 1) // b


def _tpu_tile_defaults():
    """Generation-dependent (block_g, vmem_limit_bytes)."""
    try:
        vmem_cap = int(pltpu.get_tpu_info().vmem_capacity_bytes)
    except Exception:
        vmem_cap = None
    if vmem_cap is not None and vmem_cap >= 128 * 1024 * 1024:
        # v5e / v6e: 128 MiB physical VMEM -> bigger tiles to amortize the
        # ~0.35 us per-step pipeline overhead.
        return 16384, 64 * 1024 * 1024
    # v7x (64 MiB per TensorCore) or unknown: stay conservative.
    return 8192, 48 * 1024 * 1024


def cae_kernel(x_ref, wc_ref, bc_ref, wd_ref, bd_ref, out_ref, acc_ref, *,
               chunk, n_chunks):
    # x_ref  : (48, Gt)   member-major conv patches
    # wc_ref : (160, 48)  block-diagonal conv weight (VMEM resident)
    # bc_ref : (40, 1)    conv bias
    # wd_ref : (48, 160)  block-diagonal deconv weight (VMEM resident)
    # bd_ref : (48, 1)    deconv bias (repeated per member / spatial tap)
    # out_ref: (48, Gt)   member-major deconv patches
    # acc_ref: (160, Gt)  f32 scratch: conv output, overwritten in place with the
    #                     pooled/unpooled activations.

    # --- Conv2d(3->40, k=2, s=2): one block-diagonal MXU matmul per tile.
    acc_ref[...] = jnp.dot(wc_ref[...], x_ref[...],
                           preferred_element_type=jnp.float32)

    # --- ReLU + MaxPool2d(2,2) + MaxUnpool2d(2,2), in place, lane-chunked so the
    # whole elementwise chain stays in vregs.  Keep the FIRST max of each 2x2
    # window (PyTorch tie-break), zero the other three.  The bias is identical
    # for all 4 window members, so the argmax is taken on the raw matmul outputs
    # and the bias is added only to the kept 40-row max.
    bias_c = jnp.broadcast_to(bc_ref[...], (40, chunk))   # hoisted out of the loop

    def pool_unpool(c, carry):
        s = pl.ds(pl.multiple_of(c * chunk, chunk), chunk)
        a0 = acc_ref[pl.ds(0, 40), s]
        a1 = acc_ref[pl.ds(40, 40), s]
        a2 = acc_ref[pl.ds(80, 40), s]
        a3 = acc_ref[pl.ds(120, 40), s]
        gmax = jnp.maximum(jnp.maximum(a0, a1), jnp.maximum(a2, a3))
        g = jnp.maximum(gmax + bias_c, 0.0)          # kept value: relu(conv + bias)
        k0 = a0 == gmax
        k1 = (a1 == gmax) & (~k0)
        k2 = (a2 == gmax) & (~(k0 | k1))
        k3 = (a3 == gmax) & (~(k0 | k1 | k2))
        acc_ref[pl.ds(0, 40), s] = jnp.where(k0, g, 0.0)
        acc_ref[pl.ds(40, 40), s] = jnp.where(k1, g, 0.0)
        acc_ref[pl.ds(80, 40), s] = jnp.where(k2, g, 0.0)
        acc_ref[pl.ds(120, 40), s] = jnp.where(k3, g, 0.0)
        return carry

    lax.fori_loop(0, n_chunks, pool_unpool, 0, unroll=min(8, n_chunks))
    # relu(unpool(...)) == unpool(...): kept values are already >= 0.

    # --- ConvTranspose2d(40->3, k=2, s=2): one block-diagonal MXU matmul; the
    # bias add fuses into the lane-dense (48, Gt) output store.
    out_ref[...] = (jnp.dot(wd_ref[...], acc_ref[...],
                            preferred_element_type=jnp.float32)
                    + bd_ref[...]).astype(out_ref.dtype)


def conv_autoencoder_forward(x, Wconv, bconv, Wdeconv, bdeconv, *, block_g=None):
    """x: (N, 3, H, W) float32, NCHW (PyTorch convention). Returns (N, 3, H, W)."""
    N, C, H, W = x.shape
    assert C == 3 and H % 4 == 0 and W % 4 == 0
    Hq, Wq = H // 4, W // 4
    G = N * Hq * Wq

    default_block_g, vmem_limit = _tpu_tile_defaults()
    if block_g is None:
        block_g = default_block_g
    block_g = _round_up(block_g, 128)

    # Lane tile: multiple of 128 (512 when possible so the in-kernel chunk loop
    # uses 512-lane chunks), capped near G/2 so the 1-D "parallel" grid has >= 2
    # blocks for v7x's two TensorCores, and at block_g to bound VMEM.
    half = _cdiv(G, 2)
    if half >= 512:
        tile = _round_up(half, 512)
    elif G > 128:
        tile = _round_up(half, 128)
    else:
        tile = 128
    Gt = max(128, min(block_g, tile))
    G_pad = _round_up(G, Gt)
    num_blocks = G_pad // Gt
    chunk = 512 if Gt % 512 == 0 else (256 if Gt % 256 == 0 else 128)
    n_chunks = Gt // chunk

    # --- glue: non-overlapping 2x2 conv patches, member-major, position last.
    # patches[12*m + (c*4 + kh*2 + kw), n*Hq*Wq + hq*Wq + wq]
    #   = x[n, c, 4*hq + 2*dh + kh, 4*wq + 2*dw + kw],  m = 2*dh + dw.
    # TODO(synk): fold this transpose (and the inverse one below) into the kernel
    # with memory_space=pl.ANY + strided DMA to cut end-to-end HBM traffic ~3x.
    xp = x.reshape(N, C, Hq, 2, 2, Wq, 2, 2)
    xp = jnp.transpose(xp, (3, 6, 1, 4, 7, 0, 2, 5))
    patches = xp.reshape(48, G).astype(jnp.float32)
    if G_pad != G:
        patches = jnp.pad(patches, ((0, 0), (0, G_pad - G)))

    eye4 = jnp.eye(4, dtype=jnp.float32)
    wc_blk = jnp.kron(eye4, Wconv.reshape(40, 12).astype(jnp.float32))       # (160, 48)
    wd_blk = jnp.kron(eye4, Wdeconv.reshape(40, 12).T.astype(jnp.float32))   # (48, 160)
    bc = bconv.reshape(40, 1).astype(jnp.float32)
    bd = jnp.tile(jnp.repeat(bdeconv.astype(jnp.float32), 4), 4).reshape(48, 1)

    kernel = functools.partial(cae_kernel, chunk=chunk, n_chunks=n_chunks)

    out_patches = pl.pallas_call(
        kernel,
        out_shape=jax.ShapeDtypeStruct((48, G_pad), jnp.float32),
        grid_spec=pltpu.PrefetchScalarGridSpec(
            num_scalar_prefetch=0,
            grid=(num_blocks,),
            in_specs=[
                pl.BlockSpec((48, Gt), lambda i: (0, i)),     # patches (streamed)
                pl.BlockSpec((160, 48), lambda i: (0, 0)),    # conv weight (resident)
                pl.BlockSpec((40, 1), lambda i: (0, 0)),      # conv bias
                pl.BlockSpec((48, 160), lambda i: (0, 0)),    # deconv weight
                pl.BlockSpec((48, 1), lambda i: (0, 0)),      # deconv bias
            ],
            out_specs=pl.BlockSpec((48, Gt), lambda i: (0, i)),
            scratch_shapes=[pltpu.VMEM((160, Gt), jnp.float32)],
        ),
        compiler_params=pltpu.CompilerParams(
            dimension_semantics=("parallel",),          # shards tiles across v7x's 2 TCs
            vmem_limit_bytes=vmem_limit,
        ),
    )(patches, wc_blk, bc, wd_blk, bd)

    out_patches = out_patches[:, :G]   # drop padded tail (bias-driven garbage lives there)
    # --- glue: scatter (dh, dw, c_out, di, dj, n, hq, wq) back to NCHW;
    # output pixel = y[n, c_out, 4*hq + 2*dh + di, 4*wq + 2*dw + dj].
    op = out_patches.reshape(2, 2, 3, 2, 2, N, Hq, Wq)
    y = jnp.transpose(op, (5, 2, 6, 0, 3, 7, 1, 4))
    return y.reshape(N, 3, H, W)


def reference_forward(x, Wconv, bconv, Wdeconv, bdeconv):
    """Plain-JAX reference of the same forward pass (first-max tie-break, like PyTorch)."""
    N, C, H, W = x.shape
    y = lax.conv_general_dilated(
        x, Wconv, window_strides=(2, 2), padding="VALID",
        dimension_numbers=("NCHW", "OIHW", "NCHW"))
    y = jnp.maximum(y + bconv[None, :, None, None], 0.0)          # (N, 40, H/2, W/2)
    Nc, Cc, Hh, Wh = y.shape
    yw = y.reshape(Nc, Cc, Hh // 2, 2, Wh // 2, 2)
    yw4 = jnp.transpose(yw, (0, 1, 2, 4, 3, 5)).reshape(Nc, Cc, Hh // 2, Wh // 2, 4)
    keep = jax.nn.one_hot(jnp.argmax(yw4, axis=-1), 4, dtype=y.dtype)
    yz4 = yw4 * keep                                              # pool + unpool
    yz = jnp.transpose(yz4.reshape(Nc, Cc, Hh // 2, Wh // 2, 2, 2),
                       (0, 1, 2, 4, 3, 5)).reshape(Nc, Cc, Hh, Wh)
    yz = jnp.maximum(yz, 0.0)
    t = jnp.einsum("nchw,copq->nohpwq", yz, Wdeconv)              # ConvTranspose2d k=2,s=2
    return t.reshape(N, 3, H, W) + bdeconv[None, :, None, None]


if __name__ == "__main__":
    key = jax.random.PRNGKey(0)
    k1, k2, k3, k4, kx = jax.random.split(key, 5)

    # Deterministic synthetic parameters (shapes from nn.Conv2d / nn.ConvTranspose2d).
    Wconv = jax.random.normal(k1, (40, 3, 2, 2), jnp.float32) * 0.2    # (out, in, kh, kw)
    bconv = jax.random.normal(k2, (40,), jnp.float32) * 0.1
    Wdeconv = jax.random.normal(k3, (40, 3, 2, 2), jnp.float32) * 0.2  # (in, out, kh, kw)
    bdeconv = jax.random.normal(k4, (3,), jnp.float32) * 0.1

    x = jax.random.normal(kx, (2, 3, 16, 16), jnp.float32)             # NCHW, in_channels=3

    fwd = jax.jit(conv_autoencoder_forward)
    out = jax.block_until_ready(fwd(x, Wconv, bconv, Wdeconv, bdeconv))

    ref = reference_forward(x, Wconv, bconv, Wdeconv, bdeconv)
    assert out.shape == x.shape and out.dtype == jnp.float32
    assert jnp.allclose(out, ref, atol=1e-4, rtol=1e-4), "mismatch vs reference"

    print("KERNEL_OK")
</pallas_src>

<mosaic_0001>
module attributes {stable_mosaic.version = 11 : i64} {
  func.func @cae_kernel(%arg0: i32, %arg1: memref<48x128xf32, #tpu.memory_space<vmem>>, %arg2: memref<160x48xf32, #tpu.memory_space<vmem>>, %arg3: memref<40x1xf32, #tpu.memory_space<vmem>>, %arg4: memref<48x160xf32, #tpu.memory_space<vmem>>, %arg5: memref<48x1xf32, #tpu.memory_space<vmem>>, %arg6: memref<48x128xf32, #tpu.memory_space<vmem>>, %arg7: memref<160x128xf32, #tpu.memory_space<vmem>>) attributes {dimension_semantics = [#tpu.dimension_semantics<parallel>], iteration_bounds = array<i64: 1>, scalar_prefetch = 0 : i64, scratch_operands = 1 : i64, tpu.core_type = #tpu.core_type<tc>, window_params = [{transform_indices = @transform_0, window_bounds = array<i64: 48, 128>}, {pipeline_mode = #tpu.pipeline_mode<synchronous>, transform_indices = @transform_1, window_bounds = array<i64: 160, 48>}, {pipeline_mode = #tpu.pipeline_mode<synchronous>, transform_indices = @transform_2, window_bounds = array<i64: 40, 1>}, {pipeline_mode = #tpu.pipeline_mode<synchronous>, transform_indices = @transform_3, window_bounds = array<i64: 48, 160>}, {pipeline_mode = #tpu.pipeline_mode<synchronous>, transform_indices = @transform_4, window_bounds = array<i64: 48, 1>}, {transform_indices = @transform_5, window_bounds = array<i64: 48, 128>}]} {
    %c0 = arith.constant 0 : index
    %c0_0 = arith.constant 0 : index
    %0 = vector.load %arg2[%c0, %c0_0] : memref<160x48xf32, #tpu.memory_space<vmem>>, vector<160x48xf32>
    %c0_1 = arith.constant 0 : index
    %c0_2 = arith.constant 0 : index
    %1 = vector.load %arg1[%c0_1, %c0_2] : memref<48x128xf32, #tpu.memory_space<vmem>>, vector<48x128xf32>
    %cst = arith.constant dense<0.000000e+00> : vector<160x128xf32>
    %2 = tpu.matmul %0, %1, %cst {dimension_numbers = #tpu.dot_dimension_numbers<[1], [0], [0], [1], [0, 0, 1, 1], [], []>} : vector<160x48xf32>, vector<48x128xf32>, vector<160x128xf32> -> vector<160x128xf32>
    %c0_3 = arith.constant 0 : index
    %c0_4 = arith.constant 0 : index
    %3 = vector.load %arg7[%c0_3, %c0_4] : memref<160x128xf32, #tpu.memory_space<vmem>>, vector<160x128xf32>
    tpu.vector_store %arg7[%c0_3, %c0_4], %2 {strides = array<i32>} : memref<160x128xf32, #tpu.memory_space<vmem>>, vector<160x128xf32>,
    %c0_5 = arith.constant 0 : index
    %c0_6 = arith.constant 0 : index
    %4 = vector.load %arg3[%c0_5, %c0_6] : memref<40x1xf32, #tpu.memory_space<vmem>>, vector<40x1xf32>
    %5 = vector.shape_cast %4 : vector<40x1xf32> to vector<40x1xf32>
    %6 = vector.broadcast %5 : vector<40x1xf32> to vector<40x128xf32>
    %c0_i32 = arith.constant 0 : i32
    %c128_i32 = arith.constant 128 : i32
    %7 = arith.muli %c0_i32, %c128_i32 : i32
    %8 = tpu.assume_multiple %7, 128 : i32
    %c0_7 = arith.constant 0 : index
    %9 = arith.index_cast %8 : i32 to index
    %10 = vector.load %arg7[%c0_7, %9] : memref<160x128xf32, #tpu.memory_space<vmem>>, vector<40x128xf32>
    %c40 = arith.constant 40 : index
    %11 = arith.index_cast %8 : i32 to index
    %12 = vector.load %arg7[%c40, %11] : memref<160x128xf32, #tpu.memory_space<vmem>>, vector<40x128xf32>
    %c80 = arith.constant 80 : index
    %13 = arith.index_cast %8 : i32 to index
    %14 = vector.load %arg7[%c80, %13] : memref<160x128xf32, #tpu.memory_space<vmem>>, vector<40x128xf32>
    %c120 = arith.constant 120 : index
    %15 = arith.index_cast %8 : i32 to index
    %16 = vector.load %arg7[%c120, %15] : memref<160x128xf32, #tpu.memory_space<vmem>>, vector<40x128xf32>
    %17 = arith.maximumf %10, %12 : vector<40x128xf32>
    %18 = arith.maximumf %14, %16 : vector<40x128xf32>
    %19 = arith.maximumf %17, %18 : vector<40x128xf32>
    %20 = arith.addf %19, %6 : vector<40x128xf32>
    %cst_8 = arith.constant 0.000000e+00 : f32
    %21 = vector.broadcast %cst_8 : f32 to vector<40x128xf32>
    %22 = arith.maximumf %20, %21 : vector<40x128xf32>
    %23 = arith.cmpf oeq, %10, %19 : vector<40x128xf32>
    %24 = arith.cmpf oeq, %12, %19 : vector<40x128xf32>
    %cst_9 = arith.constant dense<true> : vector<40x128xi1>
    %25 = arith.xori %23, %cst_9 : vector<40x128xi1>
    %26 = arith.andi %24, %25 : vector<40x128xi1>
    %27 = arith.cmpf oeq, %14, %19 : vector<40x128xf32>
    %28 = arith.ori %23, %26 : vector<40x128xi1>
    %cst_10 = arith.constant dense<true> : vector<40x128xi1>
    %29 = arith.xori %28, %cst_10 : vector<40x128xi1>
    %30 = arith.andi %27, %29 : vector<40x128xi1>
    %31 = arith.cmpf oeq, %16, %19 : vector<40x128xf32>
    %32 = arith.ori %23, %26 : vector<40x128xi1>
    %33 = arith.ori %32, %30 : vector<40x128xi1>
    %cst_11 = arith.constant dense<true> : vector<40x128xi1>
    %34 = arith.xori %33, %cst_11 : vector<40x128xi1>
    %35 = arith.andi %31, %34 : vector<40x128xi1>
    %cst_12 = arith.constant 0.000000e+00 : f32
    %36 = vector.broadcast %cst_12 : f32 to vector<40x128xf32>
    %37 = arith.select %23, %22, %36 : vector<40x128xi1>, vector<40x128xf32>
    %c0_13 = arith.constant 0 : index
    %38 = arith.index_cast %8 : i32 to index
    %39 = vector.load %arg7[%c0_13, %38] : memref<160x128xf32, #tpu.memory_space<vmem>>, vector<40x128xf32>
    tpu.vector_store %arg7[%c0_13, %38], %37 {strides = array<i32>} : memref<160x128xf32, #tpu.memory_space<vmem>>, vector<40x128xf32>,
    %cst_14 = arith.constant 0.000000e+00 : f32
    %40 = vector.broadcast %cst_14 : f32 to vector<40x128xf32>
    %41 = arith.select %26, %22, %40 : vector<40x128xi1>, vector<40x128xf32>
    %c40_15 = arith.constant 40 : index
    %42 = arith.index_cast %8 : i32 to index
    %43 = vector.load %arg7[%c40_15, %42] : memref<160x128xf32, #tpu.memory_space<vmem>>, vector<40x128xf32>
    tpu.vector_store %arg7[%c40_15, %42], %41 {strides = array<i32>} : memref<160x128xf32, #tpu.memory_space<vmem>>, vector<40x128xf32>,
    %cst_16 = arith.constant 0.000000e+00 : f32
    %44 = vector.broadcast %cst_16 : f32 to vector<40x128xf32>
    %45 = arith.select %30, %22, %44 : vector<40x128xi1>, vector<40x128xf32>
    %c80_17 = arith.constant 80 : index
    %46 = arith.index_cast %8 : i32 to index
    %47 = vector.load %arg7[%c80_17, %46] : memref<160x128xf32, #tpu.memory_space<vmem>>, vector<40x128xf32>
    tpu.vector_store %arg7[%c80_17, %46], %45 {strides = array<i32>} : memref<160x128xf32, #tpu.memory_space<vmem>>, vector<40x128xf32>,
    %cst_18 = arith.constant 0.000000e+00 : f32
    %48 = vector.broadcast %cst_18 : f32 to vector<40x128xf32>
    %49 = arith.select %35, %22, %48 : vector<40x128xi1>, vector<40x128xf32>
    %c120_19 = arith.constant 120 : index
    %50 = arith.index_cast %8 : i32 to index
    %51 = vector.load %arg7[%c120_19, %50] : memref<160x128xf32, #tpu.memory_space<vmem>>, vector<40x128xf32>
    tpu.vector_store %arg7[%c120_19, %50], %49 {strides = array<i32>} : memref<160x128xf32, #tpu.memory_space<vmem>>, vector<40x128xf32>,
    %c1_i32 = arith.constant 1 : i32
    %c0_20 = arith.constant 0 : index
    %c0_21 = arith.constant 0 : index
    %52 = vector.load %arg4[%c0_20, %c0_21] : memref<48x160xf32, #tpu.memory_space<vmem>>, vector<48x160xf32>
    %c0_22 = arith.constant 0 : index
    %c0_23 = arith.constant 0 : index
    %53 = vector.load %arg7[%c0_22, %c0_23] : memref<160x128xf32, #tpu.memory_space<vmem>>, vector<160x128xf32>
    %cst_24 = arith.constant dense<0.000000e+00> : vector<48x128xf32>
    %54 = tpu.matmul %52, %53, %cst_24 {dimension_numbers = #tpu.dot_dimension_numbers<[1], [0], [0], [1], [0, 0, 1, 1], [], []>} : vector<48x160xf32>, vector<160x128xf32>, vector<48x128xf32> -> vector<48x128xf32>
    %c0_25 = arith.constant 0 : index
    %c0_26 = arith.constant 0 : index
    %55 = vector.load %arg5[%c0_25, %c0_26] : memref<48x1xf32, #tpu.memory_space<vmem>>, vector<48x1xf32>
    %56 = vector.broadcast %55 : vector<48x1xf32> to vector<48x128xf32>
    %57 = arith.addf %54, %56 : vector<48x128xf32>
    %c0_27 = arith.constant 0 : index
    %c0_28 = arith.constant 0 : index
    %58 = vector.load %arg6[%c0_27, %c0_28] : memref<48x128xf32, #tpu.memory_space<vmem>>, vector<48x128xf32>
    tpu.vector_store %arg6[%c0_27, %c0_28], %57 {strides = array<i32>} : memref<48x128xf32, #tpu.memory_space<vmem>>, vector<48x128xf32>,
    return
  }
  func.func @transform_0(%arg0: i32) -> (i32, i32) {
    %c0_i32 = arith.constant 0 : i32
    %c0_i32_0 = arith.constant 0 : i32
    return %c0_i32, %arg0 : i32, i32
  }
  func.func @transform_1(%arg0: i32) -> (i32, i32) {
    %c0_i32 = arith.constant 0 : i32
    %c0_i32_0 = arith.constant 0 : i32
    %c0_i32_1 = arith.constant 0 : i32
    return %c0_i32, %c0_i32_0 : i32, i32
  }
  func.func @transform_2(%arg0: i32) -> (i32, i32) {
    %c0_i32 = arith.constant 0 : i32
    %c0_i32_0 = arith.constant 0 : i32
    %c0_i32_1 = arith.constant 0 : i32
    return %c0_i32, %c0_i32_0 : i32, i32
  }
  func.func @transform_3(%arg0: i32) -> (i32, i32) {
    %c0_i32 = arith.constant 0 : i32
    %c0_i32_0 = arith.constant 0 : i32
    %c0_i32_1 = arith.constant 0 : i32
    return %c0_i32, %c0_i32_0 : i32, i32
  }
  func.func @transform_4(%arg0: i32) -> (i32, i32) {
    %c0_i32 = arith.constant 0 : i32
    %c0_i32_0 = arith.constant 0 : i32
    %c0_i32_1 = arith.constant 0 : i32
    return %c0_i32, %c0_i32_0 : i32, i32
  }
  func.func @transform_5(%arg0: i32) -> (i32, i32) {
    %c0_i32 = arith.constant 0 : i32
    %c0_i32_0 = arith.constant 0 : i32
    return %c0_i32, %arg0 : i32, i32
  }
}

</mosaic_0001>

<bundles_post_ra>
// kernel: mul.4
= control target key start
LH: loop header
LB: loop body
LE: loop exit
PB: predicated region body
PF: predicated region fallthrough
CT: control target
= control target key end

     0   :  { %vm27_vm0 = vcmask 326656   ;;  %s110_s0 = inlined_call_operand.vmem [shape: f32[40,3,2,2], index: 0, kind: input, shape index: {}]   ;;  %s111_s1 = inlined_call_operand.vmem [shape: f32[40,12], index: 1, kind: output, shape index: {}]  }
   0x1   :  { %v54_v0 = vld [vmem:[%s110_s0 + $0xa] sm:$0x3]  ;;  %v55_v1 = vld [vmem:[%s110_s0 + $0x8] sm:$0x3]  ;;  %v56_v2 = vld [vmem:[%s110_s0 + $0x6] sm:$0x3] }
   0x2   :  { %7 = vst [vmem:[#allocation0] sm:$0x3] %v54_v0  ;;  %v57_v3 = vld [vmem:[%s110_s0 + $0x4] sm:$0x3]  ;;  %v58_v4 = vld [vmem:[%s110_s0 + $0x2] sm:$0x3] }
   0x3   :  { %11 = vst [vmem:[#allocation0 + $0x18] sm:$0x3] %v55_v1  ;;  %v24_v5 = vld [vmem:[%s110_s0] sm:$0x3] }
   0x4   :  { %15 = vst [vmem:[#allocation0 + $0x20] sm:$0x3] %v56_v2 }
   0x5   :  { %19 = vst [vmem:[#allocation0 + $0x28] sm:$0x3] %v57_v3 }
   0x6   :  { %23 = vst [vmem:[#allocation0 + $0x10] sm:$0x3] %v58_v4 }
   0x7   :  { %25 = vst [vmem:[#allocation0 + $0x8] sm:$0x3] %v24_v5 }
   0x9   :  { %v50_v6 = vld [vmem:[#allocation0] sm:$0x3]  }
   0xa   :  { %v45_v7 = vld [vmem:[#allocation0 + $0x18] sm:$0x3]   ;;  %63 = vst.msk [vmem:[%s111_s1 + $0xa] sm:$0x3] %vm27_vm0, %v50_v6  }
   0xb   :  { %v40_v8 = vld [vmem:[#allocation0 + $0x20] sm:$0x3]   ;;  %62 = vst.msk [vmem:[%s111_s1 + $0x8] sm:$0x3] %vm27_vm0, %v45_v7  }
   0xc   :  { %v35_v9 = vld [vmem:[#allocation0 + $0x28] sm:$0x3]   ;;  %61 = vst.msk [vmem:[%s111_s1 + $0x6] sm:$0x3] %vm27_vm0, %v40_v8  }
   0xd   :  { %v30_v10 = vld [vmem:[#allocation0 + $0x10] sm:$0x3]   ;;  %60 = vst.msk [vmem:[%s111_s1 + $0x4] sm:$0x3] %vm27_vm0, %v35_v9  }
   0xe   :  { %v26_v11 = vld [vmem:[#allocation0 + $0x8] sm:$0x3]   ;;  %59 = vst.msk [vmem:[%s111_s1 + $0x2] sm:$0x3] %vm27_vm0, %v30_v10  }
   0xf   :  { %28 = vst.msk [vmem:[%s111_s1] sm:$0x3] %vm27_vm0, %v26_v11  }

// kernel: tile.5
= control target key start
LH: loop header
LB: loop body
LE: loop exit
PB: predicated region body
PF: predicated region fallthrough
CT: control target
= control target key end

     0   :  { %s30_s8 = smov 4   ;;  %vm7_vm0 = vcmask 31744   ;;  %vm13_vm1 = vcmask 97344   ;;  %vm19_vm2 = vcmask 64544   ;;  %s47_s0 = inlined_call_operand.vmem [shape: f32[3,4], index: 0, kind: input, shape index: {}]   ;;  %s48_s1 = inlined_call_operand.vmem [shape: f32[12], index: 1, kind: output, shape index: {}]  }
   0x1   :  { %v4_v0 = vld [vmem:[%s47_s0] sm:$0xf]  ;;  %s29_s0 = smov 8  }
   0x2   :  { %5 = vst [vmem:[#allocation1] sm:$0xf] %v4_v0 }
   0x9   :  { %v10_v1 = vld [vmem:[#allocation1 + $0x2] sm:$0x1]   ;;  %v16_v2 = vld [vmem:[#allocation1 + $0x1] sm:$0x1]   ;;  %v6_v3 = vld [vmem:[#allocation1] sm:$0x1]  }
   0xa   :  { %11 = vrot.lane.b32.xlu0 %v10_v1, %s29_s0  ;;  %8 = vst.msk [vmem:[#allocation0] sm:$0x1] %vm7_vm0, %v6_v3  }
  0x12   :  { %17 = vrot.lane.b32.xlu0 %v16_v2, %s30_s8 }
  0x7c   :  { %v12_v4 = vpop.permute.xlu0 %11  }
  0x7d   :  { %14 = vst.msk [vmem:[#allocation0] sm:$0x1] %vm13_vm1, %v12_v4  }
  0x84   :  { %v18_v5 = vpop.permute.xlu0 %17  }
  0x85   :  { %20 = vst.msk [vmem:[#allocation0] sm:$0x1] %vm19_vm2, %v18_v5  }
  0x8c   :  { %v23_v6 = vld [vmem:[#allocation0] sm:$0x1] }
  0x8d   :  { %26 = vst [vmem:[%s48_s1] sm:$0x1] %v23_v6 }

// kernel: tile.6
= control target key start
LH: loop header
LB: loop body
LE: loop exit
PB: predicated region body
PF: predicated region fallthrough
CT: control target
= control target key end

     0   :  { %s22_s0 = inlined_call_operand.vmem [shape: f32[12], index: 0, kind: input, shape index: {}]   ;;  %s23_s1 = inlined_call_operand.vmem [shape: f32[4,12], index: 1, kind: output, shape index: {}]  }
   0x1   :  { %v4_v0 = vld [vmem:[%s22_s0] ss:$0 sm:$0xff] }
   0x2   :  { %5 = vst [vmem:[%s23_s1] sm:$0xf] %v4_v0 }

// kernel: tile.0
= control target key start
LH: loop header
LB: loop body
LE: loop exit
PB: predicated region body
PF: predicated region fallthrough
CT: control target
= control target key end

     0   :  { %s131_s8 = smov 127   ;;  %s132_s9 = smov 123   ;;  %vm7_vm0 = vcmask 7168   ;;  %s246_s0 = inlined_call_operand.vmem [shape: f32[4,12], index: 0, kind: input, shape index: {}]   ;;  %s247_s1 = inlined_call_operand.vmem [shape: f32[48,1], index: 1, kind: output, shape index: {}]  }
   0x1   :  { %v4_v0 = vld [vmem:[%s246_s0] sm:$0xf]  ;;  %s130_s0 = smov 125   ;;  %s133_s10 = smov 124  }
   0x2   :  { %5 = vst [vmem:[#allocation0] sm:$0xf] %v4_v0  ;;  %s134_s11 = smov 126   ;;  %s135_s12 = smov 122  }
   0x3   :  { %s136_s13 = smov 120   ;;  %s137_s14 = smov 121  }
   0x4   :  { %s138_s15 = smov 119   ;;  %s139_s16 = smov 117  }
   0x5   :  { %s140_s17 = smov 118  }
   0x9   :  { %v25_v1 = vld.sshfl [vmem:[#allocation0] sm:$0xff pattern:$0x22222130]  }
   0xa   :  { %26 = vrot.lane.b32.xlu1 %v25_v1, %s130_s0  ;;  %10 = vrot.lane.b32.xlu0 %v25_v1, %s131_s8  ;;  %v65_v2 = vld.sshfl [vmem:[#allocation0] sm:$0xff pattern:$0x11111302]  }
   0xb   :  { %42 = vrot.lane.b32.xlu2 %v25_v1, %s132_s9  ;;  %v6_v6 = vld [vmem:[#allocation0] sm:$0xf]  }
   0xc   :  { %8 = vst.msk [vmem:[%s247_s1] ss:$12 sm:$0xf] %vm7_vm0, %v6_v6  }
  0x12   :  { %34 = vrot.lane.b32.xlu1 %v25_v1, %s133_s10  ;;  %18 = vrot.lane.b32.xlu0 %v25_v1, %s134_s11 }
  0x13   :  { %50 = vrot.lane.b32.xlu2 %v25_v1, %s135_s12 }
  0x1a   :  { %66 = vrot.lane.b32.xlu1 %v65_v2, %s136_s13  ;;  %58 = vrot.lane.b32.xlu0 %v25_v1, %s137_s14 }
  0x1b   :  { %74 = vrot.lane.b32.xlu2 %v65_v2, %s138_s15 }
  0x22   :  { %90 = vrot.lane.b32.xlu1 %v65_v2, %s139_s16  ;;  %82 = vrot.lane.b32.xlu0 %v65_v2, %s140_s17 }
  0x65   :  { %v43_v3 = vpop.permute.xlu2 %42  }
  0x66   :  { %105 = vst.msk [vmem:[%s247_s1 + $0x5] ss:$36 sm:$0x3] %vm7_vm0, %v43_v3  }
  0x67   :  { %106 = vst.msk [vmem:[%s247_s1 - $0x7] ss:$12 sm:$0xc] %vm7_vm0, %v43_v3  }
  0x6d   :  { %v51_v4 = vpop.permute.xlu2 %50  }
  0x6e   :  { %107 = vst.msk [vmem:[%s247_s1 + $0x6] ss:$36 sm:$0x3] %vm7_vm0, %v51_v4  }
  0x6f   :  { %108 = vst.msk [vmem:[%s247_s1 - $0x6] ss:$12 sm:$0xc] %vm7_vm0, %v51_v4  }
  0x75   :  { %v75_v5 = vpop.permute.xlu2 %74  }
  0x76   :  { %113 = vst.msk [vmem:[%s247_s1 + $0x21] ss:$-24 sm:$0x3] %vm7_vm0, %v75_v5  }
  0x77   :  { %114 = vst.msk [vmem:[%s247_s1 + $0x5d] ss:$-24 sm:$0xc] %vm7_vm0, %v75_v5  }
  0x7c   :  { %v27_v7 = vpop.permute.xlu1 %26   ;;  %v11_v8 = vpop.permute.xlu0 %10  }
  0x7d   :  { %101 = vst.msk [vmem:[%s247_s1 + $0x3] ss:$36 sm:$0x3] %vm7_vm0, %v27_v7  }
  0x7e   :  { %102 = vst.msk [vmem:[%s247_s1 - $0x9] ss:$12 sm:$0xc] %vm7_vm0, %v27_v7  }
  0x7f   :  { %97 = vst.msk [vmem:[%s247_s1 + $0x1] ss:$36 sm:$0x3] %vm7_vm0, %v11_v8  }
  0x80   :  { %98 = vst.msk [vmem:[%s247_s1 - $0xb] ss:$12 sm:$0xc] %vm7_vm0, %v11_v8  }
  0x84   :  { %v35_v9 = vpop.permute.xlu1 %34   ;;  %v19_v10 = vpop.permute.xlu0 %18  }
  0x85   :  { %103 = vst.msk [vmem:[%s247_s1 + $0x4] ss:$36 sm:$0x3] %vm7_vm0, %v35_v9  }
  0x86   :  { %104 = vst.msk [vmem:[%s247_s1 - $0x8] ss:$12 sm:$0xc] %vm7_vm0, %v35_v9  }
  0x87   :  { %99 = vst.msk [vmem:[%s247_s1 + $0x2] ss:$36 sm:$0x3] %vm7_vm0, %v19_v10  }
  0x88   :  { %100 = vst.msk [vmem:[%s247_s1 - $0xa] ss:$12 sm:$0xc] %vm7_vm0, %v19_v10  }
  0x8c   :  { %v67_v11 = vpop.permute.xlu1 %66   ;;  %v59_v12 = vpop.permute.xlu0 %58  }
  0x8d   :  { %111 = vst.msk [vmem:[%s247_s1 + $0x20] ss:$-24 sm:$0x3] %vm7_vm0, %v67_v11  }
  0x8e   :  { %112 = vst.msk [vmem:[%s247_s1 + $0x5c] ss:$-24 sm:$0xc] %vm7_vm0, %v67_v11  }
  0x8f   :  { %109 = vst.msk [vmem:[%s247_s1 + $0x7] ss:$36 sm:$0x3] %vm7_vm0, %v59_v12  }
  0x90   :  { %110 = vst.msk [vmem:[%s247_s1 - $0x5] ss:$12 sm:$0xc] %vm7_vm0, %v59_v12  }
  0x94   :  { %v91_v13 = vpop.permute.xlu1 %90   ;;  %v83_v14 = vpop.permute.xlu0 %82  }
  0x95   :  { %117 = vst.msk [vmem:[%s247_s1 + $0x23] ss:$-24 sm:$0x3] %vm7_vm0, %v91_v13  }
  0x96   :  { %118 = vst.msk [vmem:[%s247_s1 + $0x5f] ss:$-24 sm:$0xc] %vm7_vm0, %v91_v13  }
  0x97   :  { %115 = vst.msk [vmem:[%s247_s1 + $0x22] ss:$-24 sm:$0x3] %vm7_vm0, %v83_v14  }
  0x98   :  { %116 = vst.msk [vmem:[%s247_s1 + $0x5e] ss:$-24 sm:$0xc] %vm7_vm0, %v83_v14  }

// kernel: conv_autoencoder_forward.1
= control target key start
LH: loop header
LB: loop body
LE: loop exit
PB: predicated region body
PF: predicated region fallthrough
CT: control target
= control target key end

     0   :  { %vm46_vm0 = vcmask 392192   ;;  %v599_v15 = vmov 0   ;;  %vm600_vm3 = vmmov 1   ;;  %v1083_v56 = vmov 0  ;;  %s1066_s0 = inlined_call_operand.vmem [shape: f32[48,128], index: 0, kind: input, shape index: {}]   ;;  %s1067_s1 = inlined_call_operand.vmem [shape: f32[160,48], index: 1, kind: input, shape index: {}]   ;;  %s1068_s2 = inlined_call_operand.vmem [shape: f32[40,1], index: 2, kind: input, shape index: {}]   ;;  %s1069_s4 = inlined_call_operand.vmem [shape: f32[48,1], index: 4, kind: input, shape index: {}]   ;;  %s1070_s3 = inlined_call_operand.vmem [shape: f32[48,160], index: 3, kind: input, shape index: {}]   ;;  %s1071_s5 = inlined_call_operand.vmem [shape: f32[48,128], index: 5, kind: output, shape index: {}]  }
   0x1   :  { %v45_v0 = vld [vmem:[%s1066_s0 + $0x28] sm:$0xff]  ;;  %v44_v1 = vld [vmem:[%s1066_s0 + $0x20] sm:$0xff]  ;;  %v43_v2 = vld [vmem:[%s1066_s0 + $0x18] sm:$0xff]  ;;  %596 = vset.pattern.permute.xlu0 %v599_v15  ;;  %597 = vset.pattern.permute.xlu1 %v599_v15  ;;  %v1085_v62 = vmov 0 }
   0x2   :  { %117 = vmatpush.msra.mxu0 %v45_v0  ;;  %583 = vmatpush.msra.mxu3 %v45_v0  ;;  %v42_v3 = vld [vmem:[%s1066_s0 + $0x10] sm:$0xff]  ;;  %v41_v4 = vld [vmem:[%s1066_s0 + $0x8] sm:$0xff]  ;;  %v40_v5 = vld [vmem:[%s1066_s0] sm:$0xff] }
   0x3   :  { %582 = vmatpush.msra.mxu2 %v45_v0  ;;  %v20_v6 = vld [vmem:[%s1067_s1] sm:$0xff]  ;;  %v31_v7 = vld [vmem:[%s1067_s1 + $0x58] sm:$0xff]  ;;  %v29_v8 = vld [vmem:[%s1067_s1 + $0x48] sm:$0xff]  ;;  %598 = vset.pattern.permute.xlu2 %v599_v15  ;;  %v1093_v15 = vmov 0 }
   0x4   :  { %118 = vmatpush.msra.mxu0 %v44_v1  ;;  %585 = vmatpush.msra.mxu3 %v44_v1  ;;  %v21_v9 = vld [vmem:[%s1067_s1 + $0x8] sm:$0xff]  ;;  %v32_v10 = vld [vmem:[%s1067_s1 + $0x60] sm:$0xff]  ;;  %v30_v11 = vld [vmem:[%s1067_s1 + $0x50] sm:$0xff] }
   0x5   :  { %584 = vmatpush.msra.mxu2 %v44_v1  ;;  %v22_v12 = vld [vmem:[%s1067_s1 + $0x10] sm:$0xff]  ;;  %v33_v13 = vld [vmem:[%s1067_s1 + $0x68] sm:$0xff]  ;;  %v204_v14 = vld [vmem:[%s1068_s2] sm:$0xff] }
   0x6   :  { %119 = vmatpush.msra.mxu0 %v43_v2  ;;  %587 = vmatpush.msra.mxu3 %v43_v2  ;;  %v23_v16 = vld [vmem:[%s1067_s1 + $0x18] sm:$0xff]  ;;  %v34_v17 = vld [vmem:[%s1067_s1 + $0x70] sm:$0xff]  ;;  %v208_v19 = vld [vmem:[%s1068_s2 + $0x20] sm:$0xff] }
   0x7   :  { %586 = vmatpush.msra.mxu2 %v43_v2  ;;  %211 = vperm.xlu0 %596, %v204_v14   ;;  %v207_v18 = vld [vmem:[%s1068_s2 + $0x18] sm:$0xff]  ;;  %v24_v20 = vld [vmem:[%s1067_s1 + $0x20] sm:$0xff]  ;;  %v206_v22 = vld [vmem:[%s1068_s2 + $0x10] sm:$0xff] }
   0x8   :  { %120 = vmatpush.msra.mxu0 %v42_v3  ;;  %589 = vmatpush.msra.mxu3 %v42_v3  ;;  %v35_v21 = vld [vmem:[%s1067_s1 + $0x78] sm:$0xff]  ;;  %v412_v23 = vld [vmem:[%s1069_s4 + $0x8] sm:$0xff]  ;;  %v36_v26 = vld [vmem:[%s1067_s1 + $0x80] sm:$0xff] }
   0x9   :  { %588 = vmatpush.msra.mxu2 %v42_v3  ;;  %226 = vperm.xlu1 %597, %v207_v18   ;;  %v205_v24 = vld [vmem:[%s1068_s2 + $0x8] sm:$0xff]  ;;  %v413_v27 = vld [vmem:[%s1069_s4 + $0x10] sm:$0xff]  ;;  %v415_v28 = vld [vmem:[%s1069_s4 + $0x20] sm:$0xff] }
   0xa   :  { %121 = vmatpush.msra.mxu0 %v41_v4  ;;  %591 = vmatpush.msra.mxu3 %v41_v4  ;;  %v25_v25 = vld [vmem:[%s1067_s1 + $0x28] sm:$0xff]  ;;  %v411_v29 = vld [vmem:[%s1069_s4] sm:$0xff]  ;;  %v26_v30 = vld [vmem:[%s1067_s1 + $0x30] sm:$0xff] }
   0xb   :  { %590 = vmatpush.msra.mxu2 %v41_v4  ;;  %216 = vperm.xlu2 %598, %v205_v24   ;;  %v37_v31 = vld [vmem:[%s1067_s1 + $0x88] sm:$0xff]  ;;  %v414_v33 = vld [vmem:[%s1069_s4 + $0x18] sm:$0xff]  ;;  %v38_v35 = vld [vmem:[%s1067_s1 + $0x90] sm:$0xff]  ;;  %v1087_v4 = vmov 0 }
   0xc   :  { %122 = vmatpush.msra.mxu0 %v40_v5  ;;  %593 = vmatpush.msra.mxu3 %v40_v5  ;;  %v416_v32 = vld [vmem:[%s1069_s4 + $0x28] sm:$0xff]  ;;  %v27_v34 = vld [vmem:[%s1067_s1 + $0x38] sm:$0xff]  ;;  %v28_v36 = vld [vmem:[%s1067_s1 + $0x40] sm:$0xff] }
   0xd   :  { %546 = vmatmul.msk.f32.vlgmr.msra.gmra.mxu0 %vm46_vm0, %v20_v6  ;;  %557 = vmatmul.msk.f32.vlgmr.msra.gmra.mxu3 %vm46_vm0, %v31_v7  ;;  %v39_v37 = vld [vmem:[%s1067_s1 + $0x98] sm:$0xff] }
   0xe   :  { %592 = vmatpush.msra.mxu2 %v40_v5 }
   0xf   :  { %555 = vmatmul.msk.f32.vlgmr.msra.gmra.mxu2 %vm46_vm0, %v29_v8  ;;  %231 = vperm.xlu0 %596, %v208_v19  }
  0x11   :  { %221 = vperm.xlu1 %597, %v206_v22  }
  0x13   :  { %419 = vperm.xlu2 %598, %v411_v29  }
  0x15   :  { %547 = vmatmul.msk.f32.gmra.mxu0 %vm46_vm0, %v21_v9  ;;  %558 = vmatmul.msk.f32.gmra.mxu3 %vm46_vm0, %v32_v10 }
  0x17   :  { %556 = vmatmul.msk.f32.gmra.mxu2 %vm46_vm0, %v30_v11  ;;  %424 = vperm.xlu0 %596, %v412_v23  }
  0x19   :  { %429 = vperm.xlu1 %597, %v413_v27  }
  0x1b   :  { %434 = vperm.xlu2 %598, %v414_v33  }
  0x1d   :  { %548 = vmatmul.msk.f32.gmra.mxu0 %vm46_vm0, %v22_v12  ;;  %559 = vmatmul.msk.f32.gmra.mxu3 %vm46_vm0, %v33_v13 }
  0x1f   :  { %439 = vperm.xlu0 %596, %v415_v28  }
  0x21   :  { %444 = vperm.xlu1 %597, %v416_v32  }
  0x25   :  { %549 = vmatmul.msk.f32.gmra.mxu0 %vm46_vm0, %v23_v16  ;;  %560 = vmatmul.msk.f32.gmra.mxu3 %vm46_vm0, %v34_v17 }
  0x2d   :  { %550 = vmatmul.msk.f32.gmra.mxu0 %vm46_vm0, %v24_v20  ;;  %561 = vmatmul.msk.f32.gmra.mxu3 %vm46_vm0, %v35_v21 }
  0x35   :  { %551 = vmatmul.msk.f32.gmra.mxu0 %vm46_vm0, %v25_v25  ;;  %562 = vmatmul.msk.f32.gmra.mxu3 %vm46_vm0, %v36_v26  ;;  %v1099_v25 = vmov 0 }
  0x3d   :  { %552 = vmatmul.msk.f32.gmra.mxu0 %vm46_vm0, %v26_v30  ;;  %563 = vmatmul.msk.f32.gmra.mxu3 %vm46_vm0, %v37_v31 }
  0x45   :  { %553 = vmatmul.msk.f32.gmra.mxu0 %vm46_vm0, %v27_v34  ;;  %564 = vmatmul.msk.f32.gmra.mxu3 %vm46_vm0, %v38_v35 }
  0x4d   :  { %554 = vmatmul.msk.f32.gmra.mxu0 %vm46_vm0, %v28_v36  ;;  %565 = vmatmul.msk.f32.gmra.mxu3 %vm46_vm0, %v39_v37 }
  0x65   :  { %v217_v61 = vpop.permute.xlu2 %216 }
  0x79   :  { %v212_v54 = vpop.permute.xlu0 %211 }
  0x7b   :  { %v227_v21 = vpop.permute.xlu1 %226 }
  0x81   :  { %v232_v29 = vpop.permute.xlu0 %231 }
  0x83   :  { %v222_v35 = vpop.permute.xlu1 %221 }
  0x8a   :  { %v762_v38 = vpop.f32.mrf.mxu0 }
  0x90   :  { %v157_v39 = vpop.f32.mrf.mxu3 }
  0x92   :  { %v764_v40 = vpop.f32.mrf.mxu0  ;;  %v774_v45 = vpop.f32.mrf.mxu2 }
  0x98   :  { %v766_v41 = vpop.f32.mrf.mxu3 }
  0x9a   :  { %v768_v42 = vpop.f32.mrf.mxu0  ;;  %v154_v48 = vpop.f32.mrf.mxu2 }
  0xa0   :  { %v770_v43 = vpop.f32.mrf.mxu3 }
  0xa2   :  { %v772_v44 = vpop.f32.mrf.mxu0 }
  0xa8   :  { %v776_v46 = vpop.f32.mrf.mxu3 }
  0xaa   :  { %v778_v47 = vpop.f32.mrf.mxu0 }
  0xab   :  { %v258_v24 = vmax.f32 %v778_v47, %v774_v45 }
  0xb0   :  { %v169_v49 = vpop.f32.mrf.mxu3 }
  0xb1   :  { %v259_v51 = vmax.f32 %v154_v48, %v169_v49 }
  0xb2   :  { %v139_v50 = vpop.f32.mrf.mxu0 }
  0xb3   :  { %v254_v52 = vmax.f32 %v762_v38, %v139_v50 }
  0xb5   :  { %v781_v53 = vmax.f32 %v254_v52, %v259_v51  ;;  %v380_v52 = vld [vmem:[%s1070_s3 + $0x8] sm:$0xff] }
  0xb7   :  { %vm1072_vm1 = vcmp.eq.f32.partialorder %v762_v38, %v781_v53  ;;  %vm284_vm2 = vcmp.eq.f32.partialorder %v139_v50, %v781_v53  ;;  %v269_v57 = vadd.f32 %v781_v53, %v212_v54  ;;  %vm299_vm7 = vcmp.eq.f32.partialorder %v154_v48, %v781_v53  ;;  %v382_v54 = vld [vmem:[%s1070_s3 + $0x18] sm:$0xff] }
  0xb8   :  { %vm289_vm4 = vmxor %vm1072_vm1, %vm600_vm3  ;;  %v172_v55 = vpop.f32.mrf.mxu3  ;;  %vm319_vm11 = vcmp.eq.f32.partialorder %v169_v49, %v781_v53 }
  0xb9   :  { %vm790_vm5 = vmand %vm284_vm2, %vm289_vm4  ;;  %v260_v59 = vmax.f32 %v157_v39, %v172_v55  ;;  %v811_v0 = vmax.f32 %v269_v57, 0.0  ;;  %v387_v57 = vld [vmem:[%s1070_s3 + $0x40] sm:$0xff] }
  0xba   :  { %v1084_v56 = vsel %vm790_vm5, 4294967295, %v1083_v56  ;;  %v142_v58 = vpop.f32.mrf.mxu0  ;;  %vm304_vm6 = vmor %vm1072_vm1, %vm790_vm5 }
  0xbb   :  { %v255_v60 = vmax.f32 %v764_v40, %v142_v58  ;;  %vm309_vm8 = vmxor %vm304_vm6, %vm600_vm3 }
  0xbc   :  { %vm803_vm9 = vmand %vm299_vm7, %vm309_vm8 }
  0xbd   :  { %v1086_v62 = vsel %vm803_vm9, 4294967295, %v1085_v62  ;;  %v807_v63 = vmax.f32 %v255_v60, %v260_v59  ;;  %vm324_vm10 = vmor %vm304_vm6, %vm803_vm9  ;;  %v420_v60 = vpop.permute.xlu2 %419 }
  0xbe   :  { %vm329_vm12 = vmxor %vm324_vm10, %vm600_vm3 }
  0xbf   :  { %vm1073_vm13 = vcmp.eq.f32.partialorder %v764_v40, %v807_v63  ;;  %vm285_vm14 = vcmp.eq.f32.partialorder %v142_v58, %v807_v63  ;;  %v270_v1 = vadd.f32 %v807_v63, %v217_v61  ;;  %vm334_vm15 = vmand %vm319_vm11, %vm329_vm12  ;;  %vm300_vm0 = vcmp.eq.f32.partialorder %v157_v39, %v807_v63  ;;  %v389_v58 = vld [vmem:[%s1070_s3 + $0x50] sm:$0xff] }
  0xc0   :  { %vm290_vm2 = vmxor %vm1073_vm13, %vm600_vm3  ;;  %v175_v2 = vpop.f32.mrf.mxu3  ;;  %v369_v3 = vsel %vm334_vm15, %v811_v0, 0.0  ;;  %vm320_vm11 = vcmp.eq.f32.partialorder %v172_v55, %v807_v63  ;;  %v384_v55 = vld [vmem:[%s1070_s3 + $0x28] sm:$0xff] }
  0xc1   :  { %vm825_vm4 = vmand %vm285_vm14, %vm290_vm2  ;;  %466 = vmatpush.msra.mxu1 %v369_v3  ;;  %v834_v6 = vmax.f32 %v270_v1, 0.0  ;;  %v261_v7 = vmax.f32 %v766_v41, %v175_v2  ;;  %v425_v1 = vpop.permute.xlu0 %424 }
  0xc2   :  { %v1088_v4 = vsel %vm825_vm4, 4294967295, %v1087_v4  ;;  %v145_v5 = vpop.f32.mrf.mxu0  ;;  %vm305_vm6 = vmor %vm1073_vm13, %vm825_vm4 }
  0xc3   :  { %v256_v8 = vmax.f32 %v768_v42, %v145_v5  ;;  %vm310_vm7 = vmxor %vm305_vm6, %vm600_vm3 }
  0xc4   :  { %vm839_vm8 = vmand %vm300_vm0, %vm310_vm7 }
  0xc5   :  { %v843_v10 = vmax.f32 %v256_v8, %v261_v7  ;;  %vm325_vm10 = vmor %vm305_vm6, %vm839_vm8  ;;  %v360_v11 = vsel %vm839_vm8, %v834_v6, 0.0 }
  0xc6   :  { %vm330_vm12 = vmxor %vm325_vm10, %vm600_vm3 }
  0xc7   :  { %vm1074_vm14 = vcmp.eq.f32.partialorder %v768_v42, %v843_v10  ;;  %vm286_vm15 = vcmp.eq.f32.partialorder %v145_v5, %v843_v10  ;;  %vm855_vm0 = vmand %vm320_vm11, %vm330_vm12  ;;  %vm301_vm10 = vcmp.eq.f32.partialorder %v766_v41, %v843_v10  ;;  %v271_v37 = vadd.f32 %v843_v10, %v222_v35 }
  0xc8   :  { %vm291_vm2 = vmxor %vm1074_vm14, %vm600_vm3  ;;  %v178_v13 = vpop.f32.mrf.mxu3  ;;  %v370_v14 = vsel %vm855_vm0, %v834_v6, 0.0 }
  0xc9   :  { %vm866_vm6 = vmand %vm286_vm15, %vm291_vm2  ;;  %v262_v17 = vmax.f32 %v770_v43, %v178_v13 }
  0xca   :  { %v1094_v15 = vsel %vm866_vm6, 4294967295, %v1093_v15  ;;  %v148_v16 = vpop.f32.mrf.mxu0  ;;  %vm306_vm7 = vmor %vm1074_vm14, %vm866_vm6  ;;  %vm321_vm6 = vcmp.eq.f32.partialorder %v175_v2, %v843_v10 }
  0xcb   :  { %v257_v18 = vmax.f32 %v772_v44, %v148_v16  ;;  %vm311_vm11 = vmxor %vm306_vm7, %vm600_vm3 }
  0xcc   :  { %vm880_vm12 = vmand %vm301_vm10, %vm311_vm11 }
  0xcd   :  { %v884_v20 = vmax.f32 %v257_v18, %v262_v17  ;;  %vm326_vm15 = vmor %vm306_vm7, %vm880_vm12 }
  0xce   :  { %vm892_vm13 = vmxor %vm326_vm15, %vm600_vm3 }
  0xcf   :  { %vm1075_vm2 = vcmp.eq.f32.partialorder %v772_v44, %v884_v20  ;;  %vm287_vm1 = vcmp.eq.f32.partialorder %v148_v16, %v884_v20  ;;  %vm302_vm15 = vcmp.eq.f32.partialorder %v770_v43, %v884_v20  ;;  %v272_v33 = vadd.f32 %v884_v20, %v227_v21  ;;  %v440_v16 = vpop.permute.xlu0 %439 }
  0xd0   :  { %vm292_vm10 = vmxor %vm1075_vm2, %vm600_vm3  ;;  %v181_v23 = vpop.f32.mrf.mxu3 }
  0xd1   :  { %vm902_vm7 = vmand %vm287_vm1, %vm292_vm10  ;;  %v263_v26 = vmax.f32 %v776_v46, %v181_v23  ;;  %v277_v41 = vmax.f32 %v272_v33, 0.0 }
  0xd2   :  { %v1100_v25 = vsel %vm902_vm7, 4294967295, %v1099_v25  ;;  %vm912_vm11 = vmor %vm1075_vm2, %vm902_vm7 }
  0xd3   :  { %v268_v28 = vmax.f32 %v258_v24, %v263_v26  ;;  %vm312_vm1 = vmxor %vm912_vm11, %vm600_vm3  ;;  %vm1112_vm8 = vnez %v1100_v25 }
  0xd4   :  { %vm921_vm10 = vmand %vm302_vm15, %vm312_vm1 }
  0xd5   :  { %v273_v31 = vadd.f32 %v268_v28, %v232_v29  ;;  %vm1082_vm14 = vcmp.eq.f32.partialorder %v778_v47, %v268_v28  ;;  %vm288_vm2 = vcmp.eq.f32.partialorder %v774_v45, %v268_v28  ;;  %vm942_vm1 = vmand %vm321_vm6, %vm892_vm13  ;;  %vm323_vm13 = vcmp.eq.f32.partialorder %v181_v23, %v268_v28 }
  0xd6   :  { %vm293_vm4 = vmxor %vm1082_vm14, %vm600_vm3  ;;  %v362_v43 = vsel %vm921_vm10, %v277_v41, 0.0  ;;  %v276_v45 = vmax.f32 %v271_v37, 0.0 }
  0xd7   :  { %vm935_vm15 = vmand %vm288_vm2, %vm293_vm4  ;;  %v278_v36 = vmax.f32 %v273_v31, 0.0  ;;  %vm303_vm4 = vcmp.eq.f32.partialorder %v776_v46, %v268_v28 }
  0xd8   :  { %vm308_vm5 = vmor %vm1082_vm14, %vm935_vm15  ;;  %vm322_vm14 = vcmp.eq.f32.partialorder %v178_v13, %v884_v20  ;;  %v361_v46 = vsel %vm880_vm12, %v276_v45, 0.0  ;;  %v371_v50 = vsel %vm942_vm1, %v276_v45, 0.0  ;;  %vm1113_vm12 = vnez %v1094_v15 }
  0xd9   :  { %vm313_vm2 = vmxor %vm308_vm5, %vm600_vm3  ;;  %vm1117_vm1 = vcmp.eq.f32.partialorder %v772_v44, %v884_v20  ;;  %v388_v44 = vld [vmem:[%s1070_s3 + $0x48] sm:$0xff] }
  0xda   :  { %vm318_vm7 = vmand %vm303_vm4, %vm313_vm2  ;;  %vm1118_vm4 = vcmp.eq.f32.partialorder %v768_v42, %v843_v10  ;;  %vm1119_vm2 = vcmp.eq.f32.partialorder %v764_v40, %v807_v63  ;;  %v386_v42 = vld [vmem:[%s1070_s3 + $0x38] sm:$0xff]  ;;  %v381_v40 = vld [vmem:[%s1070_s3 + $0x10] sm:$0xff] }
  0xdb   :  { %vm328_vm0 = vmor %vm308_vm5, %vm318_vm7  ;;  %v363_v39 = vsel %vm318_vm7, %v278_v36, 0.0 }
  0xdc   :  { %467 = vmatpush.msra.mxu1 %v363_v39  ;;  %vm333_vm6 = vmxor %vm328_vm0, %vm600_vm3 }
  0xdd   :  { %vm338_vm9 = vmand %vm323_vm13, %vm333_vm6  ;;  %vm1120_vm13 = vcmp.eq.f32.partialorder %v762_v38, %v781_v53  ;;  %v383_v38 = vld [vmem:[%s1070_s3 + $0x20] sm:$0xff]  ;;  %v390_v53 = vld [vmem:[%s1070_s3 + $0x58] sm:$0xff] }
  0xde   :  { %468 = vmatpush.msra.mxu1 %v362_v43  ;;  %v373_v48 = vsel %vm338_vm9, %v278_v36, 0.0  ;;  %vm1109_vm5 = vmor %vm912_vm11, %vm921_vm10  ;;  %vm447_vm9 = vcmask 261120   ;;  %vm1114_vm11 = vnez %v1088_v4  ;;  %vm1115_vm10 = vnez %v1084_v56  ;;  %v385_v56 = vld [vmem:[%s1070_s3 + $0x30] sm:$0xff] }
  0xdf   :  { %vm332_vm7 = vmxor %vm1109_vm5, %vm600_vm3  ;;  %513 = vmatpush.msrb.mxu2 %v373_v48  ;;  %vm1110_vm3 = vnez %v1086_v62 }
  0xe0   :  { %vm337_vm0 = vmand %vm322_vm14, %vm332_vm7  ;;  %469 = vmatpush.msra.mxu1 %v361_v46  ;;  %v359_v51 = vsel %vm1110_vm3, %v811_v0, 0.0 }
  0xe1   :  { %v372_v49 = vsel %vm337_vm0, %v277_v41, 0.0 }
  0xe2   :  { %514 = vmatpush.msrb.mxu2 %v372_v49  ;;  %470 = vmatpush.msra.mxu1 %v360_v11  ;;  %v435_v11 = vpop.permute.xlu2 %434 }
  0xe4   :  { %515 = vmatpush.msrb.mxu2 %v371_v50  ;;  %471 = vmatpush.msra.mxu1 %v359_v51 }
  0xe6   :  { %516 = vmatpush.msrb.mxu2 %v370_v14  ;;  %572 = vmatpush.msk.msra.mxu1 %vm935_vm15, %v278_v36  ;;  %vm1116_vm15 = vcmp.eq.f32.partialorder %v778_v47, %v268_v28  ;;  %v379_v47 = vld [vmem:[%s1070_s3] sm:$0xff] }
  0xe7   :  { %566 = vmatmul.msk.f32.vlgmr.msrb.gmra.mxu2 %vm447_vm9, %v380_v52 }
  0xe8   :  { %573 = vmatpush.msk.msra.mxu1 %vm1112_vm8, %v277_v41 }
  0xea   :  { %574 = vmatpush.msk.msra.mxu1 %vm1113_vm12, %v276_v45 }
  0xec   :  { %575 = vmatpush.msk.msra.mxu1 %vm1114_vm11, %v834_v6 }
  0xee   :  { %576 = vmatpush.msk.msra.mxu1 %vm1115_vm10, %v811_v0 }
  0xef   :  { %567 = vmatmul.msk.f32.gmra.mxu2 %vm447_vm9, %v382_v54 }
  0xf0   :  { %577 = vmatpush.msk.msra.mxu1 %vm1116_vm15, %v278_v36 }
  0xf2   :  { %578 = vmatpush.msk.msra.mxu1 %vm1117_vm1, %v277_v41 }
  0xf4   :  { %579 = vmatpush.msk.msra.mxu1 %vm1118_vm4, %v276_v45 }
  0xf6   :  { %580 = vmatpush.msk.msra.mxu1 %vm1119_vm2, %v834_v6  ;;  %v430_v6 = vpop.permute.xlu1 %429 }
  0xf7   :  { %568 = vmatmul.msk.f32.gmra.mxu2 %vm447_vm9, %v384_v55 }
  0xf8   :  { %581 = vmatpush.msk.msra.mxu1 %vm1120_vm13, %v811_v0 }
  0xf9   :  { %482 = vmatmul.f32.vlgmr.msra.gmra.mxu1 %v379_v47 }
  0xfe   :  { %v445_v20 = vpop.permute.xlu1 %444 }
  0xff   :  { %569 = vmatmul.msk.f32.gmra.mxu2 %vm447_vm9, %v386_v42 }
 0x101   :  { %485 = vmatmul.f32.gmra.mxu1 %v381_v40 }
 0x107   :  { %570 = vmatmul.msk.f32.gmra.mxu2 %vm447_vm9, %v388_v44 }
 0x109   :  { %488 = vmatmul.f32.gmra.mxu1 %v383_v38 }
 0x10f   :  { %571 = vmatmul.msk.f32.gmra.mxu2 %vm447_vm9, %v390_v53 }
 0x111   :  { %491 = vmatmul.f32.gmra.mxu1 %v385_v56 }
 0x119   :  { %494 = vmatmul.f32.gmra.mxu1 %v387_v57 }
 0x121   :  { %497 = vmatmul.f32.gmra.mxu1 %v389_v58 }
 0x16a   :  { %v518_v59 = vpop.f32.mrf.mxu2 }
 0x172   :  { %v521_v62 = vpop.f32.mrf.mxu2 }
 0x176   :  { %v483_v61 = vpop.f32.mrf.mxu1 }
 0x177   :  { %v484_v63 = vadd.f32 %v483_v61, %v420_v60 }
 0x179   :  { %v519_v0 = vadd.f32 %v518_v59, %v484_v63 }
 0x17a   :  { %v524_v4 = vpop.f32.mrf.mxu2 }
 0x17b   :  { %536 = vst [vmem:[%s1071_s5] sm:$0xff] %v519_v0 }
 0x17e   :  { %v486_v2 = vpop.f32.mrf.mxu1 }
 0x17f   :  { %v487_v3 = vadd.f32 %v486_v2, %v425_v1 }
 0x181   :  { %v522_v5 = vadd.f32 %v521_v62, %v487_v3 }
 0x182   :  { %v527_v10 = vpop.f32.mrf.mxu2 }
 0x183   :  { %537 = vst [vmem:[%s1071_s5 + $0x8] sm:$0xff] %v522_v5 }
 0x186   :  { %v489_v7 = vpop.f32.mrf.mxu1 }
 0x187   :  { %v490_v8 = vadd.f32 %v489_v7, %v430_v6 }
 0x189   :  { %v525_v9 = vadd.f32 %v524_v4, %v490_v8 }
 0x18a   :  { %v530_v15 = vpop.f32.mrf.mxu2 }
 0x18b   :  { %538 = vst [vmem:[%s1071_s5 + $0x10] sm:$0xff] %v525_v9 }
 0x18e   :  { %v492_v12 = vpop.f32.mrf.mxu1 }
 0x18f   :  { %v493_v13 = vadd.f32 %v492_v12, %v435_v11 }
 0x191   :  { %v528_v14 = vadd.f32 %v527_v10, %v493_v13 }
 0x192   :  { %v533_v22 = vpop.f32.mrf.mxu2 }
 0x193   :  { %539 = vst [vmem:[%s1071_s5 + $0x18] sm:$0xff] %v528_v14 }
 0x196   :  { %v495_v17 = vpop.f32.mrf.mxu1 }
 0x197   :  { %v496_v18 = vadd.f32 %v495_v17, %v440_v16 }
 0x199   :  { %v531_v19 = vadd.f32 %v530_v15, %v496_v18 }
 0x19b   :  { %540 = vst [vmem:[%s1071_s5 + $0x20] sm:$0xff] %v531_v19 }
 0x19e   :  { %v498_v21 = vpop.f32.mrf.mxu1 }
 0x19f   :  { %v499_v23 = vadd.f32 %v498_v21, %v445_v20 }
 0x1a1   :  { %v534_v24 = vadd.f32 %v533_v22, %v499_v23 }
 0x1a3   :  { %541 = vst [vmem:[%s1071_s5 + $0x28] sm:$0xff] %v534_v24 }

</bundles_post_ra>
